<compile_context>
chip_gen: v6e
topology: v6e:2x2x1
jax: 0.10.0
libtpu: 0.0.40
codegen_flags: <defaults>
</compile_context>

<pallas_src>
import jax
import jax.numpy as jnp
from jax import lax
from jax.experimental import pallas as pl
from jax.experimental.pallas import tpu as pltpu


def _linear_kernel(x_ref, w_ref, o_ref):
    # x_ref: (M, K); w_ref: (K, Nblk) — weight already stored (in, out).
    # MXU-native contraction: x @ w, f32 accumulation, cast on store.
    o_ref[...] = lax.dot_general(
        x_ref[...],
        w_ref[...],
        dimension_numbers=(((1,), (0,)), ((), ())),
        preferred_element_type=jnp.float32,
    ).astype(o_ref.dtype)


def _pick_n_splits(N, desired):
    """Largest n_splits <= desired with N % n_splits == 0 and tn lane-aligned."""
    for s in range(min(desired, N), 0, -1):
        if N % s != 0:
            continue
        tn = N // s
        if tn == N or tn % 128 == 0:
            return s
    return 1


def linear_no_bias(x, w_t, *, n_splits=4):
    """Computes x @ w_t where w_t is the (in_features, out_features) weight.

    Equivalent to nn.Linear(bias=False) applied to x with weight w_t.T.
    The N (out_features) axis is split across `n_splits` grid steps so the
    weight DMA pipelines with MXU work and both TensorCores are used on v7x.
    """
    M, K = x.shape
    K2, N = w_t.shape
    assert K == K2, f"in_features mismatch: {K} vs {K2}"

    n_splits = _pick_n_splits(N, n_splits)
    tn = N // n_splits

    x_bytes = M * K * jnp.dtype(x.dtype).itemsize
    w_bytes = K * N * jnp.dtype(w_t.dtype).itemsize
    o_bytes = M * N * jnp.dtype(x.dtype).itemsize
    cost = pl.CostEstimate(
        flops=2 * M * N * K,
        transcendentals=0,
        bytes_accessed=x_bytes + w_bytes + o_bytes,
    )

    return pl.pallas_call(
        _linear_kernel,
        out_shape=jax.ShapeDtypeStruct((M, N), x.dtype),
        grid_spec=pl.GridSpec(
            grid=(n_splits,),
            in_specs=[
                pl.BlockSpec((M, K), lambda j: (0, 0)),    # x: full, resident
                pl.BlockSpec((K, tn), lambda j: (0, j)),   # w: (K, N)-slice
            ],
            out_specs=pl.BlockSpec((M, tn), lambda j: (0, j)),
        ),
        compiler_params=pltpu.CompilerParams(
            dimension_semantics=("parallel",),
        ),
        cost_estimate=cost,
    )(x, w_t)


class M:
    """JAX mirror of the PyTorch module: Linear(1024, output_channels, bias=False)."""

    def __init__(self, output_channels, dtype, key):
        in_features = 1024
        # nn.Linear default init: uniform(-1/sqrt(in), 1/sqrt(in)) on (out, in).
        bound = 1.0 / jnp.sqrt(in_features)
        w = jax.random.uniform(
            key, (output_channels, in_features), minval=-bound, maxval=bound
        ).astype(dtype)
        # One-time transpose at construction: stored (in_features, out_features)
        # so the kernel runs the MXU-native (K, N) RHS with no runtime transpose.
        self.weight_t = jnp.asarray(w.T)

    def __call__(self, attn_weights):
        return linear_no_bias(attn_weights, self.weight_t)


if __name__ == "__main__":
    dtype = jnp.bfloat16
    output_channels = 1024

    key = jax.random.PRNGKey(0)
    k_w, k_x = jax.random.split(key)

    model = M(output_channels, dtype, k_w)

    # batch=8; in_features fixed at 1024 by the module definition
    x = jax.random.normal(k_x, (8, 1024)).astype(dtype)

    out = model(x)
    out = jax.block_until_ready(out)

    # sanity check against plain-JAX reference
    ref = jnp.dot(
        x.astype(jnp.float32), model.weight_t.astype(jnp.float32)
    ).astype(dtype)
    assert out.shape == (8, output_channels)
    assert out.dtype == dtype
    assert jnp.allclose(
        out.astype(jnp.float32), ref.astype(jnp.float32), atol=1e-1, rtol=1e-1
    )

    print("KERNEL_OK")
</pallas_src>

<mosaic_0001>
module attributes {stable_mosaic.version = 11 : i64} {
  func.func @_linear_kernel(%arg0: i32, %arg1: memref<8x1024xbf16, #tpu.memory_space<vmem>>, %arg2: memref<1024x256xbf16, #tpu.memory_space<vmem>>, %arg3: memref<8x256xbf16, #tpu.memory_space<vmem>>) attributes {dimension_semantics = [#tpu.dimension_semantics<parallel>], iteration_bounds = array<i64: 4>, scalar_prefetch = 0 : i64, scratch_operands = 0 : i64, tpu.core_type = #tpu.core_type<tc>, window_params = [{pipeline_mode = #tpu.pipeline_mode<synchronous>, transform_indices = @transform_0, window_bounds = array<i64: 8, 1024>}, {transform_indices = @transform_1, window_bounds = array<i64: 1024, 256>}, {transform_indices = @transform_2, window_bounds = array<i64: 8, 256>}]} {
    %c0 = arith.constant 0 : index
    %c0_0 = arith.constant 0 : index
    %0 = vector.load %arg1[%c0, %c0_0] : memref<8x1024xbf16, #tpu.memory_space<vmem>>, vector<8x1024xbf16>
    %c0_1 = arith.constant 0 : index
    %c0_2 = arith.constant 0 : index
    %1 = vector.load %arg2[%c0_1, %c0_2] : memref<1024x256xbf16, #tpu.memory_space<vmem>>, vector<1024x256xbf16>
    %cst = arith.constant dense<0.000000e+00> : vector<8x256xf32>
    %2 = tpu.matmul %0, %1, %cst {dimension_numbers = #tpu.dot_dimension_numbers<[1], [0], [0], [1], [0, 0, 1, 1], [], []>} : vector<8x1024xbf16>, vector<1024x256xbf16>, vector<8x256xf32> -> vector<8x256xf32>
    %3 = arith.truncf %2 : vector<8x256xf32> to vector<8x256xbf16>
    %c0_3 = arith.constant 0 : index
    %c0_4 = arith.constant 0 : index
    %4 = vector.load %arg3[%c0_3, %c0_4] : memref<8x256xbf16, #tpu.memory_space<vmem>>, vector<8x256xbf16>
    tpu.vector_store %arg3[%c0_3, %c0_4], %3 {strides = array<i32>} : memref<8x256xbf16, #tpu.memory_space<vmem>>, vector<8x256xbf16>,
    return
  }
  func.func @transform_0(%arg0: i32) -> (i32, i32) {
    %c0_i32 = arith.constant 0 : i32
    %c0_i32_0 = arith.constant 0 : i32
    %c0_i32_1 = arith.constant 0 : i32
    return %c0_i32, %c0_i32_0 : i32, i32
  }
  func.func @transform_1(%arg0: i32) -> (i32, i32) {
    %c0_i32 = arith.constant 0 : i32
    %c0_i32_0 = arith.constant 0 : i32
    return %c0_i32, %arg0 : i32, i32
  }
  func.func @transform_2(%arg0: i32) -> (i32, i32) {
    %c0_i32 = arith.constant 0 : i32
    %c0_i32_0 = arith.constant 0 : i32
    return %c0_i32, %arg0 : i32, i32
  }
}

</mosaic_0001>

<bundles_post_ra>
// kernel: tpu_custom_call.1
= control target key start
LH: loop header
LB: loop body
LE: loop exit
PB: predicated region body
PF: predicated region fallthrough
CT: control target
= control target key end

     0   :  { %7 = vsyncpa [#allocation3], 0  ;;  %s2116_s0 = inlined_call_operand.hbm [shape: bf16[8,1024], index: 0, kind: input, shape index: {}]   ;;  %s2117_s1 = inlined_call_operand.hbm [shape: bf16[1024,1024], index: 1, kind: input, shape index: {}]   ;;  %s2118_s2 = inlined_call_operand.hbm [shape: bf16[8,1024], index: 2, kind: output, shape index: {}]  }
   0x1   :  { %8 = vsyncpa [#allocation6], 0 }
   0x2   :  { %10 = vsyncpa [#allocation6 + $0x1], 0 }
   0x3   :  { %11 = vsyncpa [#allocation4], 0 }
   0x4   :  { %13 = vsyncpa [#allocation4 + $0x1], 0  ;;  %s1808_s9 = smov 0   ;;  %s1810_s10 = smov 0  }
   0x5   :  { %s1812_s11 = smov 0   ;;  %s1814_s12 = smov 0  }
   0x6 LB: > { %s1829_s13 = sadd.s32 4294967295, %s1785_s12   ;;  %s1247_s14 = sadd.s32 4294967294, %s1785_s12   ;;  %s1785_s12 = sphi %s1814_s12, %s2139_s12   ;;  %s1781_s11 = sphi %s1812_s11, %s2138_s11   ;;  %s1777_s10 = sphi %s1810_s10, %s2137_s10   ;;  %s1773_s9 = sphi %s1808_s9, %s2136_s9  }
   0x7   : > { %s1833_s15 = sadd.s32 1, %s1785_s12   ;;  %s47_s16 = sadd.s32 1, %s1781_s11 }
   0x8   : > { %s44_s17 = ssub.s32 %s1785_s12, %s1833_s15  ;;  %p54_p0 = scmp.ne.s32.totalorder %s1781_s11, %s1777_s10 }
   0x9   : > { %p45_p1 = scmp.eq.s32.totalorder %s44_s17, 0  ;;  %p55_p2 = scmp.eq.s32.totalorder %s1785_s12, 0 }
   0xa   : > { %p60_p3 = scmp.ne.s32.totalorder %s1777_s10, %s1773_s9  ;;  %p2120_p4 = scmp.eq.s32.totalorder %s1829_s13, 0 }
   0xb   : > { %s1845_s18 = scalar_select %p45_p1, %s1781_s11, %s47_s16  }
   0xc   : > { %p1847_p5 = por %p55_p2, %p54_p0  ;;  %p1853_p6 = por %p2120_p4, %p60_p3 }
   0xd   : > { %p84_p7 = scmp.eq.s32.totalorder %s1829_s13, 3  ;;  %p90_p8 = scmp.eq.s32.totalorder %s1247_s14, 3 }
   0xe   : > { %s2124_s20 = scalar_select %p1853_p6, 1, 0 }
   0xf   : > { %p1248_p9 = scmp.ge.s32.totalorder %s1785_s12, 1  ;;  %p97_p10 = scmp.lt.s32.totalorder %s1785_s12, 5 }
  0x10   : > { %p1860_p11 = por %p84_p7, %p54_p0  ;;  %p1864_p12 = por %p90_p8, %p60_p3 }
  0x11   : > { %p1868_p13 = pnand %p1248_p9, %p97_p10  ;;  %s1787_s24 = smov [#allocation2]  }
  0x12   : > { %s2125_s21 = scalar_select %p1860_p11, 1, 0 }
  0x13   : > { %s2126_s22 = scalar_select %p1864_p12, 1, 0 }
  0x14   : > { %s2127_s23 = scalar_select %p1868_p13, 1, 0 }
  0x15   : > { %p1411_p1 = pneg %p1868_p13  ;;  %s110_s25 = sshll.u32 %s1787_s24, 4  ;;  %s111_s25 = int_to_ptr.vmem [resolvable:$true] %s110_s25 }
  0x16   : > { %p1424_p2 = scmp.lt.s32.totalorder %s1785_s12, 4  ;;  %s121_s27 = sand.u32 1, %s1781_s11  }
  0x17   : > { %p1877_p0 = pnand %p1411_p1, %p2120_p4  ;;  %s1251_s29 = sshll.u32 %s121_s27, 10 }
  0x18   : > { %p1884_p3 = pnand %p1424_p2, %p1847_p5  ;;  %s1674_s30 = scalar_lea.vmem %s111_s25, 512 }
  0x19   : > { %p1665_p7 = pneg %p1877_p0  ;;  %p1675_p8 = scmp.ne.s32.totalorder %s111_s25, %s1674_s30 }
  0x1a   : > { %p1682_p12 = scmp.lt.s32.totalorder %s111_s25, %s111_s25  ;;  %p1683_p11 = scmp.lt.s32.totalorder %s1674_s30, %s1674_s30 }
  0x1b   : > { %p1677_p9 = pnand %p1675_p8, %p1665_p7 }
  0x1c   : > { %p1684_p1 = por %p1683_p11, %p1682_p12 }
  0x1d   : > { %p1678_p10 = pneg %p1677_p9 }
  0x1f   : > { %p1685_p4 = pnand %p1684_p1, %p1678_p10 }
  0x21   : > { %1688 = shalt.err (!%p1685_p4)
}
  0x22   : > { %1414 = dma.hbm_to_vmem [thread:$0]  (!%p1877_p0), %s2116_s0, 512, %s111_s25, [#allocation3]  }
  0x23   : > { %s1400_s5 = sshll.u32 %s1785_s12, 7  ;;  %s125_s6 = scalar_lea.vmem [#allocation5], %s1251_s29 }
  0x24   : > { %s132_s7 = sshll.u32 %s125_s6, 4  ;;  %s1899_s16 = scalar_lea.hbm %s2117_s1, %s1400_s5  ;;  %s1901_s7 = int_to_ptr.vmem [resolvable:$true] %s132_s7 }
  0x25   : > { %s1903_s17 = scalar_lea.sflag [#allocation6], %s121_s27  ;;  %s1689_s19 = scalar_lea.hbm %s1899_s16, 16384 }
  0x26   : > { %p1690_p4 = scmp.ne.s32.totalorder %s1899_s16, %s1689_s19  ;;  %p1691_p5 = pneg %p1884_p3 }
  0x27   : > { %s1694_s26 = scalar_lea.hbm %s2117_s1, 65536  ;;  %p1695_p2 = scmp.lt.s32.totalorder %s1899_s16, %s2117_s1 }
  0x28   : > { %p1692_p11 = pnand %p1691_p5, %p1690_p4  ;;  %p1696_p0 = scmp.lt.s32.totalorder %s1694_s26, %s1689_s19 }
  0x2a   : > { %p1693_p12 = pneg %p1692_p11  ;;  %p1697_p7 = por %p1696_p0, %p1695_p2 }
  0x2c   : > { %p1698_p8 = pnand %p1697_p7, %p1693_p12 }
  0x2e   : > { %1701 = shalt.err (!%p1698_p8)
}
  0x2f   : > { %s1702_s27 = scalar_lea.vmem %s1901_s7, 16384  ;;  %s1788_s3 = smov [#allocation5]  }
  0x30   : > { %p1703_p9 = scmp.ne.s32.totalorder %s1901_s7, %s1702_s27  ;;  %s1707_s4 = sshll.u32 %s1788_s3, 4  ;;  %s1708_s4 = int_to_ptr.vmem [resolvable:$false] %s1707_s4 }
  0x31   : > { %s1709_s5 = scalar_lea.vmem %s1708_s4, 32768  ;;  %p1710_p4 = scmp.lt.s32.totalorder %s1901_s7, %s1708_s4 }
  0x32   : > { %p1705_p10 = pnand %p1703_p9, %p1691_p5  ;;  %p1711_p11 = scmp.lt.s32.totalorder %s1709_s5, %s1702_s27 }
  0x34   : > { %p1706_p1 = pneg %p1705_p10  ;;  %p1712_p6 = por %p1711_p11, %p1710_p4 }
  0x36   : > { %p1713_p13 = pnand %p1712_p6, %p1706_p1 }
  0x38   : > { %1716 = shalt.err (!%p1713_p13)
}
  0x39   : > { %s1789_s6 = smov 512   ;;  %s1790_s8 = smov 128  }
  0x3a   : > { %s1791_s14 = smov 8   ;;  %p2130_p5 = scmp.ne.s32.totalorder %s2127_s23, 0 }
  0x3b   : > { %1418 = dma.hbm_to_vmem [thread:$0]  (!%p1884_p3), %s1899_s16, 16384, %s1901_s7, %s1903_s17, %s1789_s6, %s1790_s8, %s1791_s14  }
  0x3c   : > { %144 = sbr.rel (%p2130_p5) target bundleno = 413 (0x19d), region = 28  ;;  %p2131_p12 = scmp.eq.s32.totalorder (!%p2130_p5), %s1829_s13, 0 }
  0x41   : > { %1760 = dma.done.wait (%p2131_p12), [#allocation3], 512   ;;  %p2132_p2 = pmov %p2131_p12 }
  0x42   : > { %s1931_s19 = sand.u32 1, %s1777_s10   ;;  %p2133_p6 = scmp.ne.s32.totalorder %s2124_s20, 0 }
  0x43   : > { %1762 = vsyncadd (%p2132_p2), [#allocation3], 4294966784  ;;  %s1256_s24 = sshll.u32 %s1931_s19, 10  ;;  %s151_s25 = scalar_lea.sflag [#allocation6], %s1931_s19 }
  0x44   : > { %s1935_s26 = scalar_lea.vmem [#allocation5], %s1256_s24 }
  0x45   : > { %1764 = dma.done.wait (%p2133_p6), %s151_s25, 16384  }
  0x46   : > { %1766 = vsyncadd (%p2133_p6), %s151_s25, 4294950912  ;;  %v1463_v0 = vld [vmem:[%s1935_s26 + $0x74] ss:$8 sps:$4 sm:$0xff]   ;;  %v1467_v2 = vld [vmem:[%s1935_s26 + $0x70] ss:$8 sps:$4 sm:$0xff]   ;;  %s1257_s20 = sshll.u32 %s1931_s19, 3 }
  0x47   : > { %v1465_v1 = vld [vmem:[%s1935_s26 + $0x174] ss:$8 sps:$4 sm:$0xff]   ;;  %977 = vmatprep.subr.bf16.mxu0 %v1463_v0  ;;  %v1468_v3 = vld [vmem:[%s1935_s26 + $0x170] ss:$8 sps:$4 sm:$0xff]   ;;  %v1469_v4 = vld [vmem:[%s1935_s26 + $0x64] ss:$8 sps:$4 sm:$0xff]  }
  0x48   : > { %1018 = vmatprep.subr.bf16.mxu1 %v1465_v1  ;;  %978 = vmatpush1.bf16.msra.mxu0 %v1467_v2  ;;  %v1471_v5 = vld [vmem:[%s1935_s26 + $0x164] ss:$8 sps:$4 sm:$0xff]   ;;  %v1473_v6 = vld [vmem:[%s1935_s26 + $0x60] ss:$8 sps:$4 sm:$0xff]   ;;  %v1475_v8 = vld [vmem:[%s1935_s26 + $0x54] ss:$8 sps:$4 sm:$0xff]  }
  0x49   : > { %1019 = vmatpush1.bf16.msra.mxu1 %v1468_v3  ;;  %979 = vmatprep.subr.bf16.mxu0 %v1469_v4  ;;  %v1474_v7 = vld [vmem:[%s1935_s26 + $0x160] ss:$8 sps:$4 sm:$0xff]   ;;  %v1477_v9 = vld [vmem:[%s1935_s26 + $0x154] ss:$8 sps:$4 sm:$0xff]   ;;  %v1479_v10 = vld [vmem:[%s1935_s26 + $0x50] ss:$8 sps:$4 sm:$0xff]  }
  0x4a   : > { %1020 = vmatprep.subr.bf16.mxu1 %v1471_v5  ;;  %v1480_v11 = vld [vmem:[%s1935_s26 + $0x150] ss:$8 sps:$4 sm:$0xff]   ;;  %v1481_v12 = vld [vmem:[%s1935_s26 + $0x44] ss:$8 sps:$4 sm:$0xff]   ;;  %v1485_v14 = vld [vmem:[%s1935_s26 + $0x40] ss:$8 sps:$4 sm:$0xff]  }
  0x4b   : > { %v1483_v13 = vld [vmem:[%s1935_s26 + $0x144] ss:$8 sps:$4 sm:$0xff]   ;;  %v1486_v15 = vld [vmem:[%s1935_s26 + $0x140] ss:$8 sps:$4 sm:$0xff]   ;;  %v1487_v16 = vld [vmem:[%s1935_s26 + $0x34] ss:$8 sps:$4 sm:$0xff]  }
  0x4c   : > { %980 = vmatpush1.bf16.msra.mxu0 %v1473_v6  ;;  %v1489_v17 = vld [vmem:[%s1935_s26 + $0x134] ss:$8 sps:$4 sm:$0xff]   ;;  %v1491_v18 = vld [vmem:[%s1935_s26 + $0x30] ss:$8 sps:$4 sm:$0xff]   ;;  %v1493_v20 = vld [vmem:[%s1935_s26 + $0x24] ss:$8 sps:$4 sm:$0xff]  }
  0x4d   : > { %1021 = vmatpush1.bf16.msra.mxu1 %v1474_v7  ;;  %981 = vmatprep.subr.bf16.mxu0 %v1475_v8  ;;  %v1492_v19 = vld [vmem:[%s1935_s26 + $0x130] ss:$8 sps:$4 sm:$0xff]   ;;  %v1495_v21 = vld [vmem:[%s1935_s26 + $0x124] ss:$8 sps:$4 sm:$0xff]   ;;  %v1497_v22 = vld [vmem:[%s1935_s26 + $0x20] ss:$8 sps:$4 sm:$0xff]  }
  0x4e   : > { %1022 = vmatprep.subr.bf16.mxu1 %v1477_v9  ;;  %v1498_v23 = vld [vmem:[%s1935_s26 + $0x120] ss:$8 sps:$4 sm:$0xff]   ;;  %v1499_v24 = vld [vmem:[%s1935_s26 + $0x14] ss:$8 sps:$4 sm:$0xff]   ;;  %v1503_v26 = vld [vmem:[%s1935_s26 + $0x10] ss:$8 sps:$4 sm:$0xff]  }
  0x4f   : > { %v1501_v25 = vld [vmem:[%s1935_s26 + $0x114] ss:$8 sps:$4 sm:$0xff]   ;;  %v1504_v27 = vld [vmem:[%s1935_s26 + $0x110] ss:$8 sps:$4 sm:$0xff]   ;;  %v1505_v28 = vld [vmem:[%s1935_s26 + $0x4] ss:$8 sps:$4 sm:$0xff]  }
  0x50   : > { %982 = vmatpush1.bf16.msra.mxu0 %v1479_v10  ;;  %v1507_v29 = vld [vmem:[%s1935_s26 + $0x104] ss:$8 sps:$4 sm:$0xff]   ;;  %v1509_v30 = vld [vmem:[%s1935_s26] ss:$8 sps:$4 sm:$0xff]   ;;  %v1511_v32 = vld [vmem:[%s1935_s26 + $0xf4] ss:$8 sps:$4 sm:$0xff]  }
  0x51   : > { %1023 = vmatpush1.bf16.msra.mxu1 %v1480_v11  ;;  %983 = vmatprep.subr.bf16.mxu0 %v1481_v12  ;;  %v1510_v31 = vld [vmem:[%s1935_s26 + $0x100] ss:$8 sps:$4 sm:$0xff]   ;;  %v1513_v33 = vld [vmem:[%s1935_s26 + $0x1f4] ss:$8 sps:$4 sm:$0xff]   ;;  %v1515_v34 = vld [vmem:[%s1935_s26 + $0xf0] ss:$8 sps:$4 sm:$0xff]  }
  0x52   : > { %1024 = vmatprep.subr.bf16.mxu1 %v1483_v13  ;;  %v1516_v35 = vld [vmem:[%s1935_s26 + $0x1f0] ss:$8 sps:$4 sm:$0xff]   ;;  %v1517_v36 = vld [vmem:[%s1935_s26 + $0xe4] ss:$8 sps:$4 sm:$0xff]   ;;  %v1521_v38 = vld [vmem:[%s1935_s26 + $0xe0] ss:$8 sps:$4 sm:$0xff]  }
  0x53   : > { %v1519_v37 = vld [vmem:[%s1935_s26 + $0x1e4] ss:$8 sps:$4 sm:$0xff]   ;;  %v1522_v39 = vld [vmem:[%s1935_s26 + $0x1e0] ss:$8 sps:$4 sm:$0xff]   ;;  %v1523_v40 = vld [vmem:[%s1935_s26 + $0xd4] ss:$8 sps:$4 sm:$0xff]  }
  0x54   : > { %984 = vmatpush1.bf16.msra.mxu0 %v1485_v14  ;;  %v1525_v41 = vld [vmem:[%s1935_s26 + $0x1d4] ss:$8 sps:$4 sm:$0xff]   ;;  %v1527_v42 = vld [vmem:[%s1935_s26 + $0xd0] ss:$8 sps:$4 sm:$0xff]   ;;  %v1529_v44 = vld [vmem:[%s1935_s26 + $0xc4] ss:$8 sps:$4 sm:$0xff]  }
  0x55   : > { %1025 = vmatpush1.bf16.msra.mxu1 %v1486_v15  ;;  %985 = vmatprep.subr.bf16.mxu0 %v1487_v16  ;;  %v1528_v43 = vld [vmem:[%s1935_s26 + $0x1d0] ss:$8 sps:$4 sm:$0xff]   ;;  %v1531_v45 = vld [vmem:[%s1935_s26 + $0x1c4] ss:$8 sps:$4 sm:$0xff]   ;;  %v1533_v49 = vld [vmem:[%s1935_s26 + $0xc0] ss:$8 sps:$4 sm:$0xff]  }
  0x56   : > { %1026 = vmatprep.subr.bf16.mxu1 %v1489_v17  ;;  %v177_v46 = vld [vmem:[#allocation2] sm:$0xff]  ;;  %v178_v48 = vld [vmem:[#allocation2 + $0x8] sm:$0xff]  ;;  %v1535_v52 = vld [vmem:[%s1935_s26 + $0xb4] ss:$8 sps:$4 sm:$0xff]   ;;  %s1402_s23 = sshll.u32 %s1829_s13, 7  ;;  %s174_s28 = scalar_lea.vmem [#allocation7], %s1257_s20 }
  0x57   : > { %v1259_v47 = vcombine.high %v177_v46, %v177_v46  ;;  %v1534_v50 = vld [vmem:[%s1935_s26 + $0x1c0] ss:$8 sps:$4 sm:$0xff]   ;;  %v1261_v51 = vcombine.high %v178_v48, %v178_v48  ;;  %v1537_v53 = vld [vmem:[%s1935_s26 + $0x1b4] ss:$8 sps:$4 sm:$0xff]   ;;  %v1539_v54 = vld [vmem:[%s1935_s26 + $0xb0] ss:$8 sps:$4 sm:$0xff]   ;;  %v1258_v6 = vcombine.low %v177_v46, %v177_v46  ;;  %v1260_v7 = vcombine.low %v178_v48, %v178_v48  ;;  %s1163_s29 = scalar_lea.hbm %s2118_s2, %s1402_s23 }
  0x58   : > { %986 = vmatpush1.bf16.msra.mxu0 %v1491_v18  ;;  %v1540_v55 = vld [vmem:[%s1935_s26 + $0x1b0] ss:$8 sps:$4 sm:$0xff]   ;;  %v1541_v56 = vld [vmem:[%s1935_s26 + $0xa4] ss:$8 sps:$4 sm:$0xff]   ;;  %v1545_v58 = vld [vmem:[%s1935_s26 + $0xa0] ss:$8 sps:$4 sm:$0xff]  }
  0x59   : > { %1027 = vmatpush1.bf16.msra.mxu1 %v1492_v19  ;;  %987 = vmatprep.subr.bf16.mxu0 %v1493_v20  ;;  %v1543_v57 = vld [vmem:[%s1935_s26 + $0x1a4] ss:$8 sps:$4 sm:$0xff]   ;;  %v1546_v59 = vld [vmem:[%s1935_s26 + $0x1a0] ss:$8 sps:$4 sm:$0xff]   ;;  %v1547_v60 = vld [vmem:[%s1935_s26 + $0x94] ss:$8 sps:$4 sm:$0xff]  }
  0x5a   : > { %1028 = vmatprep.subr.bf16.mxu1 %v1495_v21  ;;  %1009 = vmatprep.mubr.bf16.mxu0 %v1259_v47  ;;  %v1549_v61 = vld [vmem:[%s1935_s26 + $0x194] ss:$8 sps:$4 sm:$0xff]   ;;  %v1551_v62 = vld [vmem:[%s1935_s26 + $0x90] ss:$8 sps:$4 sm:$0xff]   ;;  %v1553_v0 = vld [vmem:[%s1935_s26 + $0x84] ss:$8 sps:$4 sm:$0xff]  }
  0x5b   : > { %1050 = vmatprep.mubr.bf16.mxu1 %v1261_v51  ;;  %v1552_v63 = vld [vmem:[%s1935_s26 + $0x190] ss:$8 sps:$4 sm:$0xff]   ;;  %v1555_v1 = vld [vmem:[%s1935_s26 + $0x184] ss:$8 sps:$4 sm:$0xff]   ;;  %v1557_v2 = vld [vmem:[%s1935_s26 + $0x80] ss:$8 sps:$4 sm:$0xff]  }
  0x5c   : > { %988 = vmatpush1.bf16.msra.mxu0 %v1497_v22  ;;  %v1558_v3 = vld [vmem:[%s1935_s26 + $0x180] ss:$8 sps:$4 sm:$0xff]   ;;  %v1565_v4 = vld [vmem:[%s1935_s26 + $0x274] ss:$8 sps:$4 sm:$0xff]   ;;  %v1563_v8 = vld [vmem:[%s1935_s26 + $0x270] ss:$8 sps:$4 sm:$0xff]  }
  0x5d   : > { %1029 = vmatpush1.bf16.msra.mxu1 %v1498_v23  ;;  %989 = vmatprep.subr.bf16.mxu0 %v1499_v24  ;;  %v1568_v5 = vld [vmem:[%s1935_s26 + $0x374] ss:$8 sps:$4 sm:$0xff]   ;;  %v1566_v9 = vld [vmem:[%s1935_s26 + $0x370] ss:$8 sps:$4 sm:$0xff]   ;;  %v1571_v10 = vld [vmem:[%s1935_s26 + $0x264] ss:$8 sps:$4 sm:$0xff]  }
  0x5e   : > { %1030 = vmatprep.subr.bf16.mxu1 %v1501_v25  ;;  %v1574_v11 = vld [vmem:[%s1935_s26 + $0x364] ss:$8 sps:$4 sm:$0xff]   ;;  %v1569_v12 = vld [vmem:[%s1935_s26 + $0x260] ss:$8 sps:$4 sm:$0xff]   ;;  %v1577_v14 = vld [vmem:[%s1935_s26 + $0x254] ss:$8 sps:$4 sm:$0xff]  }
  0x5f   : > { %v1572_v13 = vld [vmem:[%s1935_s26 + $0x360] ss:$8 sps:$4 sm:$0xff]   ;;  %v1580_v15 = vld [vmem:[%s1935_s26 + $0x354] ss:$8 sps:$4 sm:$0xff]   ;;  %v1575_v16 = vld [vmem:[%s1935_s26 + $0x250] ss:$8 sps:$4 sm:$0xff]  }
  0x60   : > { %990 = vmatpush1.bf16.msra.mxu0 %v1503_v26  ;;  %v1578_v17 = vld [vmem:[%s1935_s26 + $0x350] ss:$8 sps:$4 sm:$0xff]   ;;  %v1583_v18 = vld [vmem:[%s1935_s26 + $0x244] ss:$8 sps:$4 sm:$0xff]   ;;  %v1581_v20 = vld [vmem:[%s1935_s26 + $0x240] ss:$8 sps:$4 sm:$0xff]  }
  0x61   : > { %1031 = vmatpush1.bf16.msra.mxu1 %v1504_v27  ;;  %991 = vmatprep.subr.bf16.mxu0 %v1505_v28  ;;  %v1586_v19 = vld [vmem:[%s1935_s26 + $0x344] ss:$8 sps:$4 sm:$0xff]   ;;  %v1584_v21 = vld [vmem:[%s1935_s26 + $0x340] ss:$8 sps:$4 sm:$0xff]   ;;  %v1589_v22 = vld [vmem:[%s1935_s26 + $0x234] ss:$8 sps:$4 sm:$0xff]  }
  0x62   : > { %1032 = vmatprep.subr.bf16.mxu1 %v1507_v29  ;;  %v1592_v23 = vld [vmem:[%s1935_s26 + $0x334] ss:$8 sps:$4 sm:$0xff]   ;;  %v1587_v24 = vld [vmem:[%s1935_s26 + $0x230] ss:$8 sps:$4 sm:$0xff]   ;;  %v1595_v26 = vld [vmem:[%s1935_s26 + $0x224] ss:$8 sps:$4 sm:$0xff]  }
  0x63   : > { %v1590_v25 = vld [vmem:[%s1935_s26 + $0x330] ss:$8 sps:$4 sm:$0xff]   ;;  %v1598_v27 = vld [vmem:[%s1935_s26 + $0x324] ss:$8 sps:$4 sm:$0xff]   ;;  %v1593_v28 = vld [vmem:[%s1935_s26 + $0x220] ss:$8 sps:$4 sm:$0xff]  }
  0x64   : > { %992 = vmatpush1.bf16.msra.mxu0 %v1509_v30  ;;  %v1596_v29 = vld [vmem:[%s1935_s26 + $0x320] ss:$8 sps:$4 sm:$0xff]   ;;  %v1601_v30 = vld [vmem:[%s1935_s26 + $0x214] ss:$8 sps:$4 sm:$0xff]   ;;  %v1619_v46 = vld [vmem:[%s1935_s26 + $0x2e4] ss:$8 sps:$4 sm:$0xff]  }
  0x65   : > { %1033 = vmatpush1.bf16.msra.mxu1 %v1510_v31  ;;  %993 = vmatprep.subr.bf16.mxu0 %v1511_v32  ;;  %v1604_v31 = vld [vmem:[%s1935_s26 + $0x314] ss:$8 sps:$4 sm:$0xff]   ;;  %v1622_v47 = vld [vmem:[%s1935_s26 + $0x3e4] ss:$8 sps:$4 sm:$0xff]   ;;  %v1617_v48 = vld [vmem:[%s1935_s26 + $0x2e0] ss:$8 sps:$4 sm:$0xff]  }
  0x66   : > { %1034 = vmatprep.subr.bf16.mxu1 %v1513_v33  ;;  %v2031_v32 = vld [vmem:[#allocation2 + $0x10] sm:$0xff]  ;;  %v2033_v33 = vld [vmem:[#allocation2 + $0x18] sm:$0xff]  ;;  %s1165_s7 = sshll.u32 %s174_s28, 4  ;;  %s1151_s30 = scalar_lea.sflag [#allocation4], %s1931_s19  ;;  %s1166_s7 = int_to_ptr.vmem [resolvable:$true] %s1165_s7 }
  0x67   : > { %v1628_v51 = vld [vmem:[%s1935_s26 + $0x3d4] ss:$8 sps:$4 sm:$0xff]   ;;  %s1717_s27 = scalar_lea.vmem %s1166_s7, 128  ;;  %p2134_p3 = scmp.ne.s32.totalorder %s2125_s21, 0 }
  0x68   : > { %994 = vmatpush2.bf16.msra.mxu0 %v1515_v34  ;;  %v1263_v34 = vcombine.high %v2031_v32, %v2031_v32  ;;  %p1718_p13 = scmp.ne.s32.totalorder %s1166_s7, %s1717_s27  ;;  %s1792_s13 = smov [#allocation7]  }
  0x69   : > { %1035 = vmatpush2.bf16.msra.mxu1 %v1516_v35  ;;  %995 = vmatprep.subr.bf16.mxu0 %v1517_v36  ;;  %v1265_v35 = vcombine.high %v2033_v33, %v2033_v33  ;;  %v1599_v36 = vld [vmem:[%s1935_s26 + $0x210] ss:$8 sps:$4 sm:$0xff]   ;;  %s1721_s3 = sshll.u32 %s1792_s13, 4  ;;  %s1722_s3 = int_to_ptr.vmem [resolvable:$false] %s1721_s3 }
  0x6a   : > { %1036 = vmatprep.subr.bf16.mxu1 %v1519_v37  ;;  %v1602_v37 = vld [vmem:[%s1935_s26 + $0x310] ss:$8 sps:$4 sm:$0xff]   ;;  %p1719_p0 = pnand %p1718_p13, %p2134_p3  ;;  %s1723_s4 = scalar_lea.vmem %s1722_s3, 256 }
  0x6b   : > { %p1724_p8 = scmp.lt.s32.totalorder %s1166_s7, %s1722_s3  ;;  %p1725_p9 = scmp.lt.s32.totalorder %s1723_s4, %s1717_s27 }
  0x6c   : > { %996 = vmatpush2.bf16.msra.mxu0 %v1521_v38  ;;  %v1607_v38 = vld [vmem:[%s1935_s26 + $0x204] ss:$8 sps:$4 sm:$0xff]   ;;  %p1720_p7 = pneg %p1719_p0 }
  0x6d   : > { %1037 = vmatpush2.bf16.msra.mxu1 %v1522_v39  ;;  %997 = vmatprep.subr.bf16.mxu0 %v1523_v40  ;;  %v1610_v39 = vld [vmem:[%s1935_s26 + $0x304] ss:$8 sps:$4 sm:$0xff]   ;;  %v1605_v40 = vld [vmem:[%s1935_s26 + $0x200] ss:$8 sps:$4 sm:$0xff]   ;;  %p1726_p10 = por %p1725_p9, %p1724_p8 }
  0x6e   : > { %1038 = vmatprep.subr.bf16.mxu1 %v1525_v41  ;;  %v1608_v41 = vld [vmem:[%s1935_s26 + $0x300] ss:$8 sps:$4 sm:$0xff]  }
  0x6f   : > { %p1727_p1 = pnand %p1726_p10, %p1720_p7 }
  0x70   : > { %998 = vmatpush2.bf16.msra.mxu0 %v1527_v42  ;;  %v1613_v42 = vld [vmem:[%s1935_s26 + $0x2f4] ss:$8 sps:$4 sm:$0xff]  }
  0x71   : > { %1039 = vmatpush2.bf16.msra.mxu1 %v1528_v43  ;;  %999 = vmatprep.subr.bf16.mxu0 %v1529_v44  ;;  %v1616_v43 = vld [vmem:[%s1935_s26 + $0x3f4] ss:$8 sps:$4 sm:$0xff]   ;;  %v1611_v44 = vld [vmem:[%s1935_s26 + $0x2f0] ss:$8 sps:$4 sm:$0xff]  }
  0x72   : > { %1040 = vmatprep.subr.bf16.mxu1 %v1531_v45  ;;  %v1614_v45 = vld [vmem:[%s1935_s26 + $0x3f0] ss:$8 sps:$4 sm:$0xff]  }
  0x74   : > { %1000 = vmatpush2.bf16.msra.mxu0 %v1533_v49  ;;  %v1620_v49 = vld [vmem:[%s1935_s26 + $0x3e0] ss:$8 sps:$4 sm:$0xff]  }
  0x75   : > { %1041 = vmatpush2.bf16.msra.mxu1 %v1534_v50  ;;  %1001 = vmatprep.subr.bf16.mxu0 %v1535_v52  ;;  %v1625_v50 = vld [vmem:[%s1935_s26 + $0x2d4] ss:$8 sps:$4 sm:$0xff]   ;;  %v1623_v52 = vld [vmem:[%s1935_s26 + $0x2d0] ss:$8 sps:$4 sm:$0xff]  }
  0x76   : > { %1042 = vmatprep.subr.bf16.mxu1 %v1537_v53  ;;  %v1626_v53 = vld [vmem:[%s1935_s26 + $0x3d0] ss:$8 sps:$4 sm:$0xff]  }
  0x78   : > { %1002 = vmatpush2.bf16.msra.mxu0 %v1539_v54  ;;  %v1631_v54 = vld [vmem:[%s1935_s26 + $0x2c4] ss:$8 sps:$4 sm:$0xff]  }
  0x79   : > { %1043 = vmatpush2.bf16.msra.mxu1 %v1540_v55  ;;  %1003 = vmatprep.subr.bf16.mxu0 %v1541_v56  ;;  %v1634_v55 = vld [vmem:[%s1935_s26 + $0x3c4] ss:$8 sps:$4 sm:$0xff]   ;;  %v1629_v56 = vld [vmem:[%s1935_s26 + $0x2c0] ss:$8 sps:$4 sm:$0xff]  }
  0x7a   : > { %1044 = vmatprep.subr.bf16.mxu1 %v1543_v57  ;;  %v1632_v57 = vld [vmem:[%s1935_s26 + $0x3c0] ss:$8 sps:$4 sm:$0xff]  }
  0x7c   : > { %1004 = vmatpush2.bf16.msra.mxu0 %v1545_v58  ;;  %v1637_v58 = vld [vmem:[%s1935_s26 + $0x2b4] ss:$8 sps:$4 sm:$0xff]  }
  0x7d   : > { %1045 = vmatpush2.bf16.msra.mxu1 %v1546_v59  ;;  %1005 = vmatprep.subr.bf16.mxu0 %v1547_v60  ;;  %v1640_v59 = vld [vmem:[%s1935_s26 + $0x3b4] ss:$8 sps:$4 sm:$0xff]   ;;  %v1635_v60 = vld [vmem:[%s1935_s26 + $0x2b0] ss:$8 sps:$4 sm:$0xff]  }
  0x7e   : > { %1046 = vmatprep.subr.bf16.mxu1 %v1549_v61  ;;  %v1638_v61 = vld [vmem:[%s1935_s26 + $0x3b0] ss:$8 sps:$4 sm:$0xff]  }
  0x80   : > { %1006 = vmatpush2.bf16.msra.mxu0 %v1551_v62  ;;  %v1643_v62 = vld [vmem:[%s1935_s26 + $0x2a4] ss:$8 sps:$4 sm:$0xff]  }
  0x81   : > { %1047 = vmatpush2.bf16.msra.mxu1 %v1552_v63  ;;  %1007 = vmatprep.subr.bf16.mxu0 %v1553_v0  ;;  %v1646_v63 = vld [vmem:[%s1935_s26 + $0x3a4] ss:$8 sps:$4 sm:$0xff]   ;;  %v1641_v0 = vld [vmem:[%s1935_s26 + $0x2a0] ss:$8 sps:$4 sm:$0xff]  }
  0x82   : > { %1048 = vmatprep.subr.bf16.mxu1 %v1555_v1  ;;  %v1644_v1 = vld [vmem:[%s1935_s26 + $0x3a0] ss:$8 sps:$4 sm:$0xff]  }
  0x84   : > { %1008 = vmatpush2.bf16.msra.mxu0 %v1557_v2  ;;  %v1649_v2 = vld [vmem:[%s1935_s26 + $0x294] ss:$8 sps:$4 sm:$0xff]  }
  0x85   : > { %1049 = vmatpush2.bf16.msra.mxu1 %v1558_v3  ;;  %1059 = vmatprep.subr.bf16.mxu0 %v1565_v4  ;;  %v1652_v3 = vld [vmem:[%s1935_s26 + $0x394] ss:$8 sps:$4 sm:$0xff]   ;;  %v1647_v4 = vld [vmem:[%s1935_s26 + $0x290] ss:$8 sps:$4 sm:$0xff]  }
  0x86   : > { %1100 = vmatprep.subr.bf16.mxu1 %v1568_v5  ;;  %v1650_v5 = vld [vmem:[%s1935_s26 + $0x390] ss:$8 sps:$4 sm:$0xff]  }
  0x87   : > { %1010 = vmatmul.mubr.bf16.vlgmr.msra.gmra.mxu0 %v1258_v6  ;;  %v1655_v6 = vld [vmem:[%s1935_s26 + $0x284] ss:$8 sps:$4 sm:$0xff]  }
  0x88   : > { %1051 = vmatmul.mubr.bf16.vlgmr.msra.gmra.mxu1 %v1260_v7  ;;  %1060 = vmatpush1.bf16.msra.mxu0 %v1563_v8  ;;  %v1658_v7 = vld [vmem:[%s1935_s26 + $0x384] ss:$8 sps:$4 sm:$0xff]   ;;  %v1653_v8 = vld [vmem:[%s1935_s26 + $0x280] ss:$8 sps:$4 sm:$0xff]  }
  0x89   : > { %1101 = vmatpush1.bf16.msra.mxu1 %v1566_v9  ;;  %1061 = vmatprep.subr.bf16.mxu0 %v1571_v10  ;;  %v1656_v9 = vld [vmem:[%s1935_s26 + $0x380] ss:$8 sps:$4 sm:$0xff]   ;;  %v1262_v10 = vcombine.low %v2031_v32, %v2031_v32 }
  0x8a   : > { %1102 = vmatprep.subr.bf16.mxu1 %v1574_v11  ;;  %1091 = vmatprep.mubr.bf16.mxu0 %v1263_v34  ;;  %v1264_v11 = vcombine.low %v2033_v33, %v2033_v33 }
  0x8b   : > { %1132 = vmatprep.mubr.bf16.mxu1 %v1265_v35 }
  0x8c   : > { %1062 = vmatpush1.bf16.msra.mxu0 %v1569_v12 }
  0x8d   : > { %1103 = vmatpush1.bf16.msra.mxu1 %v1572_v13  ;;  %1063 = vmatprep.subr.bf16.mxu0 %v1577_v14 }
  0x8e   : > { %1104 = vmatprep.subr.bf16.mxu1 %v1580_v15 }
  0x90   : > { %1064 = vmatpush1.bf16.msra.mxu0 %v1575_v16 }
  0x91   : > { %1105 = vmatpush1.bf16.msra.mxu1 %v1578_v17  ;;  %1065 = vmatprep.subr.bf16.mxu0 %v1583_v18 }
  0x92   : > { %1106 = vmatprep.subr.bf16.mxu1 %v1586_v19 }
  0x94   : > { %1066 = vmatpush1.bf16.msra.mxu0 %v1581_v20 }
  0x95   : > { %1107 = vmatpush1.bf16.msra.mxu1 %v1584_v21  ;;  %1067 = vmatprep.subr.bf16.mxu0 %v1589_v22 }
  0x96   : > { %1108 = vmatprep.subr.bf16.mxu1 %v1592_v23 }
  0x98   : > { %1068 = vmatpush1.bf16.msra.mxu0 %v1587_v24 }
  0x99   : > { %1109 = vmatpush1.bf16.msra.mxu1 %v1590_v25  ;;  %1069 = vmatprep.subr.bf16.mxu0 %v1595_v26 }
  0x9a   : > { %1110 = vmatprep.subr.bf16.mxu1 %v1598_v27 }
  0x9c   : > { %1070 = vmatpush1.bf16.msra.mxu0 %v1593_v28 }
  0x9d   : > { %1111 = vmatpush1.bf16.msra.mxu1 %v1596_v29  ;;  %1071 = vmatprep.subr.bf16.mxu0 %v1601_v30 }
  0x9e   : > { %1112 = vmatprep.subr.bf16.mxu1 %v1604_v31 }
  0xa0   : > { %1072 = vmatpush1.bf16.msra.mxu0 %v1599_v36 }
  0xa1   : > { %1113 = vmatpush1.bf16.msra.mxu1 %v1602_v37  ;;  %1073 = vmatprep.subr.bf16.mxu0 %v1607_v38 }
  0xa2   : > { %1114 = vmatprep.subr.bf16.mxu1 %v1610_v39 }
  0xa4   : > { %1074 = vmatpush1.bf16.msra.mxu0 %v1605_v40 }
  0xa5   : > { %1115 = vmatpush1.bf16.msra.mxu1 %v1608_v41  ;;  %1075 = vmatprep.subr.bf16.mxu0 %v1613_v42 }
  0xa6   : > { %1116 = vmatprep.subr.bf16.mxu1 %v1616_v43 }
  0xa8   : > { %1076 = vmatpush2.bf16.msra.mxu0 %v1611_v44 }
  0xa9   : > { %1117 = vmatpush2.bf16.msra.mxu1 %v1614_v45  ;;  %1077 = vmatprep.subr.bf16.mxu0 %v1619_v46 }
  0xaa   : > { %1118 = vmatprep.subr.bf16.mxu1 %v1622_v47 }
  0xac   : > { %1078 = vmatpush2.bf16.msra.mxu0 %v1617_v48 }
  0xad   : > { %1119 = vmatpush2.bf16.msra.mxu1 %v1620_v49  ;;  %1079 = vmatprep.subr.bf16.mxu0 %v1625_v50 }
  0xae   : > { %1120 = vmatprep.subr.bf16.mxu1 %v1628_v51 }
  0xb0   : > { %1080 = vmatpush2.bf16.msra.mxu0 %v1623_v52 }
  0xb1   : > { %1121 = vmatpush2.bf16.msra.mxu1 %v1626_v53  ;;  %1081 = vmatprep.subr.bf16.mxu0 %v1631_v54 }
  0xb2   : > { %1122 = vmatprep.subr.bf16.mxu1 %v1634_v55 }
  0xb4   : > { %1082 = vmatpush2.bf16.msra.mxu0 %v1629_v56 }
  0xb5   : > { %1123 = vmatpush2.bf16.msra.mxu1 %v1632_v57  ;;  %1083 = vmatprep.subr.bf16.mxu0 %v1637_v58 }
  0xb6   : > { %1124 = vmatprep.subr.bf16.mxu1 %v1640_v59 }
  0xb8   : > { %1084 = vmatpush2.bf16.msra.mxu0 %v1635_v60 }
  0xb9   : > { %1125 = vmatpush2.bf16.msra.mxu1 %v1638_v61  ;;  %1085 = vmatprep.subr.bf16.mxu0 %v1643_v62 }
  0xba   : > { %1126 = vmatprep.subr.bf16.mxu1 %v1646_v63 }
  0xbc   : > { %1086 = vmatpush2.bf16.msra.mxu0 %v1641_v0 }
  0xbd   : > { %1127 = vmatpush2.bf16.msra.mxu1 %v1644_v1  ;;  %1087 = vmatprep.subr.bf16.mxu0 %v1649_v2 }
  0xbe   : > { %1128 = vmatprep.subr.bf16.mxu1 %v1652_v3 }
  0xc0   : > { %1088 = vmatpush2.bf16.msra.mxu0 %v1647_v4 }
  0xc1   : > { %1129 = vmatpush2.bf16.msra.mxu1 %v1650_v5  ;;  %1089 = vmatprep.subr.bf16.mxu0 %v1655_v6 }
  0xc2   : > { %1130 = vmatprep.subr.bf16.mxu1 %v1658_v7 }
  0xc4   : > { %1090 = vmatpush2.bf16.msra.mxu0 %v1653_v8 }
  0xc5   : > { %1131 = vmatpush2.bf16.msra.mxu1 %v1656_v9 }
  0xc7   : > { %1092 = vmatmul.mubr.bf16.vlgmr.msra.gmra.mxu0 %v1262_v10 }
  0xc8   : > { %1133 = vmatmul.mubr.bf16.vlgmr.msra.gmra.mxu1 %v1264_v11 }
 0x147   : > { %v1011_v12 = vpop.f32.mrf.mxu0 }
 0x148   : > { %v1052_v13 = vpop.f32.mrf.mxu1 }
 0x149   : > { %v1053_v14 = vadd.f32 %v1052_v13, %v1011_v12  ;;  %v1013_v15 = vpop.f32.mrf.mxu0 }
 0x14a   : > { %v1054_v16 = vpop.f32.mrf.mxu1 }
 0x14b   : > { %v1015_v17 = vpop.f32.mrf.mxu0  ;;  %v1055_v23 = vadd.f32 %v1054_v16, %v1013_v15 }
 0x14c   : > { %v1056_v18 = vpop.f32.mrf.mxu1 }
 0x14d   : > { %v1016_v19 = vpop.f32.mrf.mxu0 }
 0x14e   : > { %v1057_v20 = vpop.f32.mrf.mxu1 }
 0x187   : > { %v1093_v21 = vpop.f32.mrf.mxu0 }
 0x188   : > { %v1134_v22 = vpop.f32.mrf.mxu1  ;;  %v1094_v24 = vadd.f32 %v1093_v21, %v1053_v14 }
 0x189   : > { %v1095_v25 = vpop.f32.mrf.mxu0 }
 0x18a   : > { %v1136_v26 = vpop.f32.mrf.mxu1  ;;  %v1096_v27 = vadd.f32 %v1095_v25, %v1055_v23  ;;  %v1135_v30 = vadd.f32 %v1134_v22, %v1094_v24 }
 0x18b   : > { %v1097_v28 = vpop.f32.mrf.mxu0 }
 0x18c   : > { %v1138_v29 = vpop.f32.mrf.mxu1  ;;  %v1137_v31 = vadd.f32 %v1136_v26, %v1096_v27 }
 0x18d   : > { %v1098_v32 = vpop.f32.mrf.mxu0 }
 0x18e   : > { %v1139_v33 = vpop.f32.mrf.mxu1  ;;  %v1401_v34 = vpack.c.bf16 %v1137_v31, %v1135_v30 }
 0x190   : > { %1149 = vst [vmem:[%s174_s28] sm:$0xff] %v1401_v34 }
 0x191   : > { %1730 = shalt.err (!%p1727_p1)
}
 0x192   : > { %s1731_s5 = scalar_lea.hbm %s1163_s29, 128  ;;  %s1735_s14 = scalar_lea.hbm %s2118_s2, 512 }
 0x193   : > { %p1732_p4 = scmp.ne.s32.totalorder %s1163_s29, %s1731_s5  ;;  %p1736_p12 = scmp.lt.s32.totalorder %s1163_s29, %s2118_s2 }
 0x194   : > { %p1737_p2 = scmp.lt.s32.totalorder %s1735_s14, %s1731_s5 }
 0x195   : > { %p1733_p11 = pnand %p1732_p4, %p2134_p3 }
 0x196   : > { %p1738_p6 = por %p1737_p2, %p1736_p12 }
 0x197   : > { %p1734_p5 = pneg %p1733_p11 }
 0x199   : > { %p1739_p13 = pnand %p1738_p6, %p1734_p5 }
 0x19b   : > { %1742 = shalt.err (!%p1739_p13)
}
 0x19c   : > { %1409 = dma.vmem_to_hbm [thread:$0]  (%p2134_p3), %s1166_s7, 128, %s1163_s29, %s1151_s30  }
 0x19d PF: > { %p1426_p0 = scmp.ge.s32.totalorder %s1785_s12, 2  ;;  %s1177_s25 = sand.u32 1, %s1773_s9  }
 0x19e   : > { %p2135_p7 = scmp.ne.s32.totalorder %s2126_s22, 0  ;;  %s1178_s26 = scalar_lea.sflag [#allocation4], %s1177_s25 }
 0x1a0   : > { %p1420_p8 = pnand %p1426_p0, %p2135_p7 }
 0x1a2   : > { %p1421_p9 = pneg %p1420_p8 }
 0x1a4   : > { %1768 = dma.done.wait (%p1421_p9), %s1178_s26, 128  }
 0x1a5   : > { %1770 = vsyncadd (%p1421_p9), %s1178_s26, 4294967168  ;;  %p16_p10 = scmp.ge.s32.totalorder %s1833_s15, 6   ;;  %s2136_s9 = smov %s1777_s10 }
 0x1a6   : > { %s2137_s10 = smov %s1781_s11  ;;  %s2138_s11 = smov %s1845_s18 }
 0x1a7   : > { %s2139_s12 = smov %s1833_s15  ;;  %18 = sbr.rel (!%p16_p10) target bundleno = 6 (0x6), region = 78 }
 0x1ac   :  { %1183 = vsyncpa [#allocation3], 1 }
 0x1ad   :  { %1185 = vsyncpa [#allocation3 + $0x1], 1 }
 0x1ae   :  { %1186 = vsyncpa [#allocation6], 1 }
 0x1af   :  { %1188 = vsyncpa [#allocation6 + $0x1], 1 }
 0x1b0   :  { %1189 = vsyncpa [#allocation4], 1 }
 0x1b1   :  { %1191 = vsyncpa [#allocation4 + $0x1], 1 }

</bundles_post_ra>
